<compile_context>
chip_gen: v6e
topology: v6e:2x2x1
jax: 0.10.0
libtpu: 0.0.40
codegen_flags: <defaults>
</compile_context>

<pallas_src>
import functools

import jax
import jax.numpy as jnp
from jax.experimental import pallas as pl
from jax.experimental.pallas import tpu as pltpu

IN_DIM = 24 * 3      # 72
UNITS = [2]          # matches `unitss = [2]` in the reference
OUT_DIM = 7 * 24     # 168

# Batch tile: multiple of 8 sublanes; 512-2048 rows reaches ~85% of HBM roofline
# on v6e.  Double-buffered footprint at TB=1024 is ~2 MiB -> fits v5e's 16 MiB
# scoped VMEM, v6e/v7x's 32 MiB scoped default, and v7x's 64 MiB physical VMEM.
DEFAULT_TB = 1024


def _mlp_kernel(x_ref, w1_ref, b1_ref, w2_ref, b2_ref, o_ref):
    # Layer 1: Linear(72, 2) on the MXU (N=2 under-utilizes columns, but the
    # kernel is HBM-bound so this is not worth "fixing" with padding).
    h = jnp.dot(x_ref[...], w1_ref[...], preferred_element_type=jnp.float32)
    h = jnp.maximum(h + b1_ref[...], 0.0)           # bias (1, 2) broadcasts; ReLU
    # TODO(synk): training-mode Dropout(0.3) not implemented (eval identity).

    # Layer 2: Linear(2, 168) as a rank-2 update on the VPU instead of a K=2
    # MXU contraction:  o = h[:,0]*w2[0,:] + h[:,1]*w2[1,:] + b2
    o = (h[:, 0:1] * w2_ref[0:1, :]
         + h[:, 1:2] * w2_ref[1:2, :]
         + b2_ref[...])                             # b2 (1, 168) broadcasts
    o_ref[...] = o


@functools.partial(jax.jit, static_argnames=("block_b",))
def a9_pg_forward(x, w1, b1, w2, b2, *, block_b=DEFAULT_TB):
    """x: (B, 72) float32 -> (B, 7, 24) float32."""
    B = x.shape[0]

    # Pick a batch tile: multiple of 8, no larger than the (padded) batch.
    b_pad8 = ((B + 7) // 8) * 8
    tb = min(block_b, b_pad8)
    b_pad = ((B + tb - 1) // tb) * tb
    if b_pad != B:
        x = jnp.pad(x, ((0, b_pad - B), (0, 0)))

    grid = (b_pad // tb,)

    out_flat = pl.pallas_call(
        _mlp_kernel,
        out_shape=jax.ShapeDtypeStruct((b_pad, OUT_DIM), jnp.float32),
        grid_spec=pltpu.PrefetchScalarGridSpec(
            num_scalar_prefetch=0,
            grid=grid,
            in_specs=[
                # Batch-tiled activations.
                pl.BlockSpec((tb, IN_DIM), lambda i: (i, 0)),
                # Weights / biases: constant index maps -> VMEM-resident.
                pl.BlockSpec((IN_DIM, UNITS[0]), lambda i: (0, 0)),
                pl.BlockSpec((1, UNITS[0]), lambda i: (0, 0)),
                pl.BlockSpec((UNITS[-1], OUT_DIM), lambda i: (0, 0)),
                pl.BlockSpec((1, OUT_DIM), lambda i: (0, 0)),
            ],
            out_specs=pl.BlockSpec((tb, OUT_DIM), lambda i: (i, 0)),
        ),
        compiler_params=pltpu.CompilerParams(
            dimension_semantics=("parallel",),      # shard batch tiles over TCs
        ),
    )(x, w1, b1, w2, b2)

    return out_flat[:B].reshape(B, 7, 24)


def init_params(key):
    """Deterministic init mimicking nn.Linear's uniform(-1/sqrt(fan_in), ...)."""
    k1, k2, k3, k4 = jax.random.split(key, 4)
    lim1 = 1.0 / (IN_DIM ** 0.5)
    lim2 = 1.0 / (UNITS[-1] ** 0.5)
    w1 = jax.random.uniform(k1, (IN_DIM, UNITS[0]), jnp.float32, -lim1, lim1)
    b1 = jax.random.uniform(k2, (1, UNITS[0]), jnp.float32, -lim1, lim1)
    w2 = jax.random.uniform(k3, (UNITS[-1], OUT_DIM), jnp.float32, -lim2, lim2)
    b2 = jax.random.uniform(k4, (1, OUT_DIM), jnp.float32, -lim2, lim2)
    return w1, b1, w2, b2


def reference_forward(x, w1, b1, w2, b2):
    h = jnp.maximum(x @ w1 + b1, 0.0)
    return (h @ w2 + b2).reshape(-1, 7, 24)


if __name__ == "__main__":
    key = jax.random.PRNGKey(0)
    kx, kp = jax.random.split(key)

    # Small deterministic test batch (real inputs are one-hot triplets per cell;
    # random floats are fine for exercising the kernel math).
    B = 8
    x = jax.random.uniform(kx, (B, IN_DIM), jnp.float32)
    w1, b1, w2, b2 = init_params(kp)

    out = a9_pg_forward(x, w1, b1, w2, b2)
    out = jax.block_until_ready(out)

    ref = reference_forward(x, w1, b1, w2, b2)
    assert out.shape == (B, 7, 24), out.shape
    assert jnp.allclose(out, ref, atol=1e-5, rtol=1e-5), "mismatch vs reference"

    # Also exercise the batch-tiled path with a non-tile-aligned larger batch.
    B2 = 2052
    x2 = jax.random.uniform(kx, (B2, IN_DIM), jnp.float32)
    out2 = jax.block_until_ready(a9_pg_forward(x2, w1, b1, w2, b2))
    ref2 = reference_forward(x2, w1, b1, w2, b2)
    assert out2.shape == (B2, 7, 24), out2.shape
    assert jnp.allclose(out2, ref2, atol=1e-5, rtol=1e-5), "mismatch (tiled) vs reference"

    print("KERNEL_OK")
</pallas_src>

<mosaic_0001>
module attributes {stable_mosaic.version = 11 : i64} {
  func.func @_mlp_kernel(%arg0: i32, %arg1: memref<8x72xf32, #tpu.memory_space<vmem>>, %arg2: memref<72x2xf32, #tpu.memory_space<vmem>>, %arg3: memref<1x2xf32, #tpu.memory_space<vmem>>, %arg4: memref<2x168xf32, #tpu.memory_space<vmem>>, %arg5: memref<1x168xf32, #tpu.memory_space<vmem>>, %arg6: memref<8x168xf32, #tpu.memory_space<vmem>>) attributes {dimension_semantics = [#tpu.dimension_semantics<parallel>], iteration_bounds = array<i64: 1>, scalar_prefetch = 0 : i64, scratch_operands = 0 : i64, tpu.core_type = #tpu.core_type<tc>, window_params = [{transform_indices = @transform_0, window_bounds = array<i64: 8, 72>}, {pipeline_mode = #tpu.pipeline_mode<synchronous>, transform_indices = @transform_1, window_bounds = array<i64: 72, 2>}, {pipeline_mode = #tpu.pipeline_mode<synchronous>, transform_indices = @transform_2, window_bounds = array<i64: 1, 2>}, {pipeline_mode = #tpu.pipeline_mode<synchronous>, transform_indices = @transform_3, window_bounds = array<i64: 2, 168>}, {pipeline_mode = #tpu.pipeline_mode<synchronous>, transform_indices = @transform_4, window_bounds = array<i64: 1, 168>}, {transform_indices = @transform_5, window_bounds = array<i64: 8, 168>}]} {
    %c0 = arith.constant 0 : index
    %c0_0 = arith.constant 0 : index
    %0 = vector.load %arg1[%c0, %c0_0] : memref<8x72xf32, #tpu.memory_space<vmem>>, vector<8x72xf32>
    %c0_1 = arith.constant 0 : index
    %c0_2 = arith.constant 0 : index
    %1 = vector.load %arg2[%c0_1, %c0_2] : memref<72x2xf32, #tpu.memory_space<vmem>>, vector<72x2xf32>
    %cst = arith.constant dense<0.000000e+00> : vector<8x2xf32>
    %2 = tpu.matmul %0, %1, %cst {dimension_numbers = #tpu.dot_dimension_numbers<[1], [0], [0], [1], [0, 0, 1, 1], [], []>} : vector<8x72xf32>, vector<72x2xf32>, vector<8x2xf32> -> vector<8x2xf32>
    %c0_3 = arith.constant 0 : index
    %c0_4 = arith.constant 0 : index
    %3 = vector.load %arg3[%c0_3, %c0_4] : memref<1x2xf32, #tpu.memory_space<vmem>>, vector<1x2xf32>
    %4 = vector.broadcast %3 : vector<1x2xf32> to vector<8x2xf32>
    %5 = arith.addf %2, %4 : vector<8x2xf32>
    %cst_5 = arith.constant 0.000000e+00 : f32
    %6 = vector.broadcast %cst_5 : f32 to vector<8x2xf32>
    %7 = arith.maximumf %5, %6 : vector<8x2xf32>
    %8 = vector.extract_strided_slice %7 {offsets = [0, 0], sizes = [8, 1], strides = [1, 1]} : vector<8x2xf32> to vector<8x1xf32>
    %c0_6 = arith.constant 0 : index
    %c0_7 = arith.constant 0 : index
    %9 = vector.load %arg4[%c0_6, %c0_7] : memref<2x168xf32, #tpu.memory_space<vmem>>, vector<1x168xf32>
    %10 = vector.broadcast %8 : vector<8x1xf32> to vector<8x168xf32>
    %11 = vector.broadcast %9 : vector<1x168xf32> to vector<8x168xf32>
    %12 = arith.mulf %10, %11 : vector<8x168xf32>
    %13 = vector.extract_strided_slice %7 {offsets = [0, 1], sizes = [8, 1], strides = [1, 1]} : vector<8x2xf32> to vector<8x1xf32>
    %c1 = arith.constant 1 : index
    %c0_8 = arith.constant 0 : index
    %14 = vector.load %arg4[%c1, %c0_8] : memref<2x168xf32, #tpu.memory_space<vmem>>, vector<1x168xf32>
    %15 = vector.broadcast %13 : vector<8x1xf32> to vector<8x168xf32>
    %16 = vector.broadcast %14 : vector<1x168xf32> to vector<8x168xf32>
    %17 = arith.mulf %15, %16 : vector<8x168xf32>
    %18 = arith.addf %12, %17 : vector<8x168xf32>
    %c0_9 = arith.constant 0 : index
    %c0_10 = arith.constant 0 : index
    %19 = vector.load %arg5[%c0_9, %c0_10] : memref<1x168xf32, #tpu.memory_space<vmem>>, vector<1x168xf32>
    %20 = vector.broadcast %19 : vector<1x168xf32> to vector<8x168xf32>
    %21 = arith.addf %18, %20 : vector<8x168xf32>
    %c0_11 = arith.constant 0 : index
    %c0_12 = arith.constant 0 : index
    %22 = vector.load %arg6[%c0_11, %c0_12] : memref<8x168xf32, #tpu.memory_space<vmem>>, vector<8x168xf32>
    tpu.vector_store %arg6[%c0_11, %c0_12], %21 {strides = array<i32>} : memref<8x168xf32, #tpu.memory_space<vmem>>, vector<8x168xf32>,
    return
  }
  func.func @transform_0(%arg0: i32) -> (i32, i32) {
    %c0_i32 = arith.constant 0 : i32
    %c0_i32_0 = arith.constant 0 : i32
    return %arg0, %c0_i32 : i32, i32
  }
  func.func @transform_1(%arg0: i32) -> (i32, i32) {
    %c0_i32 = arith.constant 0 : i32
    %c0_i32_0 = arith.constant 0 : i32
    %c0_i32_1 = arith.constant 0 : i32
    return %c0_i32, %c0_i32_0 : i32, i32
  }
  func.func @transform_2(%arg0: i32) -> (i32, i32) {
    %c0_i32 = arith.constant 0 : i32
    %c0_i32_0 = arith.constant 0 : i32
    %c0_i32_1 = arith.constant 0 : i32
    return %c0_i32, %c0_i32_0 : i32, i32
  }
  func.func @transform_3(%arg0: i32) -> (i32, i32) {
    %c0_i32 = arith.constant 0 : i32
    %c0_i32_0 = arith.constant 0 : i32
    %c0_i32_1 = arith.constant 0 : i32
    return %c0_i32, %c0_i32_0 : i32, i32
  }
  func.func @transform_4(%arg0: i32) -> (i32, i32) {
    %c0_i32 = arith.constant 0 : i32
    %c0_i32_0 = arith.constant 0 : i32
    %c0_i32_1 = arith.constant 0 : i32
    return %c0_i32, %c0_i32_0 : i32, i32
  }
  func.func @transform_5(%arg0: i32) -> (i32, i32) {
    %c0_i32 = arith.constant 0 : i32
    %c0_i32_0 = arith.constant 0 : i32
    return %arg0, %c0_i32 : i32, i32
  }
}

</mosaic_0001>

<bundles_post_ra>
// kernel: a9_pg_forward.1
= control target key start
LH: loop header
LB: loop body
LE: loop exit
PB: predicated region body
PF: predicated region fallthrough
CT: control target
= control target key end

     0   :  { %v213_v0 = vmov 0.0   ;;  %vm214_vm0 = vmmov 0   ;;  %vm37_vm1 = vcmask 588800   ;;  %v215_v11 = vmov 0   ;;  %s295_s1 = inlined_call_operand.vmem [shape: f32[72,2], index: 1, kind: input, shape index: {}]   ;;  %s296_s0 = inlined_call_operand.vmem [shape: f32[8,72], index: 0, kind: input, shape index: {}]   ;;  %s297_s2 = inlined_call_operand.vmem [shape: f32[1,2], index: 2, kind: input, shape index: {}]   ;;  %s298_s3 = inlined_call_operand.vmem [shape: f32[2,168], index: 3, kind: input, shape index: {}]   ;;  %s299_s4 = inlined_call_operand.vmem [shape: f32[1,168], index: 4, kind: input, shape index: {}]   ;;  %s300_s5 = inlined_call_operand.vmem [shape: f32[8,168], index: 5, kind: output, shape index: {}]  }
   0x1   :  { %186 = vmatprep.subr.mxu0 %v213_v0  ;;  %v29_v1 = vld [vmem:[%s295_s1 + $0x40] sm:$0xff]  ;;  %v28_v2 = vld [vmem:[%s295_s1 + $0x38] sm:$0xff]  ;;  %204 = vmatprep.mubr.msk.f32.mxu0 %vm214_vm0, %v213_v0  ;;  %v27_v3 = vld [vmem:[%s295_s1 + $0x30] sm:$0xff]  ;;  %v216_v17 = vmov 1   ;;  %v119_v18 = vlaneseq  ;;  %vm167_vm2 = vcmask 326656  }
   0x2   :  { %187 = vmatpush3.msra.mxu0 %v29_v1  ;;  %v26_v4 = vld [vmem:[%s295_s1 + $0x28] sm:$0xff]  ;;  %v25_v5 = vld [vmem:[%s295_s1 + $0x20] sm:$0xff]  ;;  %v24_v6 = vld [vmem:[%s295_s1 + $0x18] sm:$0xff]  ;;  %211 = vset.pattern.permute.xlu0 %v215_v11 }
   0x3   :  { %188 = vmatprep.subr.mxu0 %v213_v0  ;;  %v23_v7 = vld [vmem:[%s295_s1 + $0x10] sm:$0xff]  ;;  %v22_v8 = vld [vmem:[%s295_s1 + $0x8] sm:$0xff]  ;;  %v21_v9 = vld [vmem:[%s295_s1] sm:$0xff]  ;;  %v120_v19 = vshrl.u32 %v119_v18, 7 }
   0x4   :  { %189 = vmatpush3.msra.mxu0 %v28_v2  ;;  %v20_v10 = vld [vmem:[%s296_s0] sm:$0xff] }
   0x5   :  { %190 = vmatprep.subr.mxu0 %v213_v0  ;;  %v173_v12 = vld [vmem:[%s297_s2] ss:$0 sm:$0xff]  ;;  %v121_v20 = vsub.s32 0, %v120_v19  ;;  %v125_v21 = vsub.s32 1, %v120_v19 }
   0x6   :  { %191 = vmatpush3.msra.mxu0 %v27_v3  ;;  %v112_v22 = vld [vmem:[%s298_s3] ss:$2 sm:$0x3]  ;;  %v175_v23 = vld [vmem:[%s298_s3 + $0x1] ss:$2 sm:$0x3] }
   0x7   :  { %192 = vmatprep.subr.mxu0 %v213_v0  ;;  %v122_v25 = vrot.slane %v112_v22, %v121_v20  ;;  %v126_v26 = vrot.slane %v112_v22, %v125_v21  ;;  %v141_v27 = vrot.slane %v175_v23, %v121_v20  ;;  %v145_v28 = vrot.slane %v175_v23, %v125_v21  ;;  %v152_v29 = vld [vmem:[%s299_s4] sm:$0x3] }
   0x8   :  { %193 = vmatpush3.msra.mxu0 %v26_v4  ;;  %v157_v30 = vrot.slane %v152_v29, %v121_v20  ;;  %v161_v31 = vrot.slane %v152_v29, %v125_v21 }
   0x9   :  { %194 = vmatprep.subr.mxu0 %v213_v0 }
   0xa   :  { %195 = vmatpush3.msra.mxu0 %v25_v5 }
   0xb   :  { %196 = vmatprep.subr.mxu0 %v213_v0 }
   0xc   :  { %197 = vmatpush3.msra.mxu0 %v24_v6 }
   0xd   :  { %198 = vmatprep.subr.mxu0 %v213_v0 }
   0xe   :  { %199 = vmatpush3.msra.mxu0 %v23_v7 }
   0xf   :  { %200 = vmatprep.subr.mxu0 %v213_v0 }
  0x10   :  { %201 = vmatpush3.msra.mxu0 %v22_v8 }
  0x11   :  { %202 = vmatprep.subr.mxu0 %v213_v0 }
  0x12   :  { %203 = vmatpush3.msra.mxu0 %v21_v9 }
  0x13   :  { %205 = vmatmul.mubr.msk.f32.vlgmr.msra.gmra.mxu0 %vm37_vm1, %v20_v10 }
  0xd3   :  { %v107_v13 = vpop.f32.mrf.mxu0 }
  0xd4   :  { %v108_v14 = vadd.f32 %v173_v12, %v107_v13 }
  0xd5   :  { %v206_v15 = vpop.f32.mrf.mxu0 }
  0xd6   :  { %v111_v16 = vmax.f32 %v108_v14, 0.0 }
  0xd8   :  { %115 = vperm.xlu0 %211, %v111_v16  }
  0xdc   :  { %212 = vset.pattern.permute.xlu0 %v216_v17 }
  0xdd   :  { %134 = vperm.xlu0 %212, %v111_v16  }
 0x153   :  { %v116_v24 = vpop.permute.xlu0 %115 }
 0x154   :  { %v129_v33 = vmul.f32 %v122_v25, %v116_v24  ;;  %v130_v34 = vmul.f32 %v126_v26, %v116_v24 }
 0x158   :  { %v135_v32 = vpop.permute.xlu0 %134 }
 0x159   :  { %v148_v35 = vmul.f32 %v141_v27, %v135_v32  ;;  %v149_v36 = vmul.f32 %v145_v28, %v135_v32 }
 0x15b   :  { %v150_v37 = vadd.f32 %v148_v35, %v129_v33  ;;  %v151_v38 = vadd.f32 %v149_v36, %v130_v34 }
 0x15d   :  { %v164_v39 = vadd.f32 %v157_v30, %v150_v37  ;;  %v165_v40 = vadd.f32 %v161_v31, %v151_v38 }
 0x15f   :  { %166 = vst [vmem:[%s300_s5] sm:$0xff] %v164_v39  ;;  %168 = vst.msk [vmem:[%s300_s5 + $0x8] sm:$0xff] %vm167_vm2, %v165_v40 }

</bundles_post_ra>
